<compile_context>
chip_gen: v5e
topology: v5e:2x2
jax: 0.10.0
libtpu: 0.0.40
codegen_flags: <defaults>
</compile_context>

<pallas_src>
import functools

import jax
import jax.numpy as jnp
from jax.experimental import pallas as pl
from jax.experimental.pallas import tpu as pltpu


def _round_up(n: int, m: int) -> int:
    return ((n + m - 1) // m) * m


def _rlcar_kernel(x_ref, w1_ref, b1_ref, w2_ref, b2_ref, w3_ref, b3_ref, o_ref):
    # x_ref: (F, TILE_B) f32, batch on lanes.
    x = x_ref[...]

    # fc1 + relu   (W1 @ x + b1, column-wise == torch Linear on rows)
    h1 = jnp.dot(w1_ref[...], x, preferred_element_type=jnp.float32) + b1_ref[...]
    h1 = jnp.maximum(h1, 0.0)

    # fc2 + relu
    h2 = jnp.dot(w2_ref[...], h1, preferred_element_type=jnp.float32) + b2_ref[...]
    h2 = jnp.maximum(h2, 0.0)

    # output + softmax over the action axis (axis 0 in this transposed layout),
    # numerically-stable max-subtracted form (matches torch F.softmax).
    logits = jnp.dot(w3_ref[...], h2, preferred_element_type=jnp.float32) + b3_ref[...]
    m = jnp.max(logits, axis=0, keepdims=True)
    e = jnp.exp(logits - m)
    s = jnp.sum(e, axis=0, keepdims=True)
    o_ref[...] = e * pl.reciprocal(s, approx=True)


@functools.partial(jax.jit, static_argnames=("tile_b",))
def rlcar_forward(x, params, *, tile_b: int = 512):
    """Fused RLCar MLP forward on TPU via Pallas.

    x:      (B, F) array (any real dtype; cast to float32 like `.type(torch.float)`).
    params: dict with w1 (16, F), b1 (16, 1), w2 (16, 16), b2 (16, 1),
            w3 (A, 16), b3 (A, 1)  -- PyTorch (out, in) weight layout.
    Returns (B, A) float32 softmax probabilities.
    """
    B, F = x.shape
    H = params["w1"].shape[0]
    A = params["w3"].shape[0]

    # Cast once at the boundary, put batch on the lane axis.
    xt = x.astype(jnp.float32).T                      # (F, B)

    # Lane-aligned batch tile; pad batch so the grid divides evenly.
    tb = min(tile_b, _round_up(B, 128))
    bp = _round_up(B, tb)
    if bp != B:
        xt = jnp.pad(xt, ((0, 0), (0, bp - B)))
    grid = (bp // tb,)

    # Per-tile specs: x/out tiled over batch; weights/biases VMEM-resident.
    x_spec = pl.BlockSpec((F, tb), lambda i: (0, i))
    o_spec = pl.BlockSpec((A, tb), lambda i: (0, i))
    w1_spec = pl.BlockSpec((H, F), lambda i: (0, 0))
    b1_spec = pl.BlockSpec((H, 1), lambda i: (0, 0))
    w2_spec = pl.BlockSpec((H, H), lambda i: (0, 0))
    b2_spec = pl.BlockSpec((H, 1), lambda i: (0, 0))
    w3_spec = pl.BlockSpec((A, H), lambda i: (0, 0))
    b3_spec = pl.BlockSpec((A, 1), lambda i: (0, 0))

    weight_bytes = 4 * (H * F + H + H * H + H + A * H + A)
    cost = pl.CostEstimate(
        flops=2 * bp * (F * H + H * H + H * A) + 4 * bp * (2 * H + 2 * A),
        transcendentals=bp * (A + 1),                 # exp per logit + reciprocal
        bytes_accessed=4 * bp * (F + A) + weight_bytes,
    )

    out_t = pl.pallas_call(
        _rlcar_kernel,
        out_shape=jax.ShapeDtypeStruct((A, bp), jnp.float32),
        grid=grid,
        in_specs=[x_spec, w1_spec, b1_spec, w2_spec, b2_spec, w3_spec, b3_spec],
        out_specs=o_spec,
        compiler_params=pltpu.CompilerParams(
            dimension_semantics=("parallel",),
        ),
        cost_estimate=cost,
    )(
        xt,
        params["w1"], params["b1"],
        params["w2"], params["b2"],
        params["w3"], params["b3"],
    )

    # Transpose back to the PyTorch-facing (B, A) layout and drop padding.
    return out_t[:, :B].T


def init_rlcar_params(key, input_size, n_actions, prev_state_lookback):
    """Deterministic synthetic init matching the module's parameter shapes.

    Weights use PyTorch's (out_features, in_features) layout; biases are
    (out_features, 1) so they broadcast along the lane (batch) axis in-kernel.
    """
    in_features = (input_size + 2) * prev_state_lookback
    hidden = 16
    k1, k2, k3, k4, k5, k6 = jax.random.split(key, 6)
    return {
        "w1": (jax.random.normal(k1, (hidden, in_features), jnp.float32)
               * (1.0 / jnp.sqrt(in_features))),
        "b1": jax.random.normal(k2, (hidden, 1), jnp.float32) * 0.01,
        "w2": (jax.random.normal(k3, (hidden, hidden), jnp.float32)
               * (1.0 / jnp.sqrt(hidden))),
        "b2": jax.random.normal(k4, (hidden, 1), jnp.float32) * 0.01,
        "w3": (jax.random.normal(k5, (n_actions, hidden), jnp.float32)
               * (1.0 / jnp.sqrt(hidden))),
        "b3": jax.random.normal(k6, (n_actions, 1), jnp.float32) * 0.01,
    }


def _reference_forward(x, params):
    """Pure-JAX reference (matches the PyTorch module semantics)."""
    x = x.astype(jnp.float32)
    h1 = jnp.maximum(x @ params["w1"].T + params["b1"].T, 0.0)
    h2 = jnp.maximum(h1 @ params["w2"].T + params["b2"].T, 0.0)
    logits = h2 @ params["w3"].T + params["b3"].T
    return jax.nn.softmax(logits, axis=-1)


if __name__ == "__main__":
    # Small shapes consistent with the module:
    #   input_size=6, prev_state_lookback=2  ->  in_features = (6+2)*2 = 16
    #   n_actions=4, batch=8
    input_size = 6
    prev_state_lookback = 2
    n_actions = 4
    batch = 8
    in_features = (input_size + 2) * prev_state_lookback

    key = jax.random.PRNGKey(0)
    kx, kp = jax.random.split(key)

    params = init_rlcar_params(kp, input_size, n_actions, prev_state_lookback)
    x = jax.random.normal(kx, (batch, in_features), jnp.float32)

    probs = rlcar_forward(x, params)
    probs = jax.block_until_ready(probs)

    # Sanity: output shape, softmax rows ~sum to 1, and matches JAX reference.
    # (Tolerance accounts for the approximate-reciprocal softmax denominator.)
    ref = _reference_forward(x, params)
    assert probs.shape == (batch, n_actions)
    assert bool(jnp.all(jnp.abs(jnp.sum(probs, axis=-1) - 1.0) < 5e-3))
    assert bool(jnp.max(jnp.abs(probs - ref)) < 2e-3)

    print("KERNEL_OK")
</pallas_src>

<mosaic_0001>
module attributes {stable_mosaic.version = 11 : i64} {
  func.func @_rlcar_kernel(%arg0: i32, %arg1: memref<16x128xf32, #tpu.memory_space<vmem>>, %arg2: memref<16x16xf32, #tpu.memory_space<vmem>>, %arg3: memref<16x1xf32, #tpu.memory_space<vmem>>, %arg4: memref<16x16xf32, #tpu.memory_space<vmem>>, %arg5: memref<16x1xf32, #tpu.memory_space<vmem>>, %arg6: memref<4x16xf32, #tpu.memory_space<vmem>>, %arg7: memref<4x1xf32, #tpu.memory_space<vmem>>, %arg8: memref<4x128xf32, #tpu.memory_space<vmem>>) attributes {dimension_semantics = [#tpu.dimension_semantics<parallel>], iteration_bounds = array<i64: 1>, scalar_prefetch = 0 : i64, scratch_operands = 0 : i64, tpu.core_type = #tpu.core_type<tc>, window_params = [{transform_indices = @transform_0, window_bounds = array<i64: 16, 128>}, {pipeline_mode = #tpu.pipeline_mode<synchronous>, transform_indices = @transform_1, window_bounds = array<i64: 16, 16>}, {pipeline_mode = #tpu.pipeline_mode<synchronous>, transform_indices = @transform_2, window_bounds = array<i64: 16, 1>}, {pipeline_mode = #tpu.pipeline_mode<synchronous>, transform_indices = @transform_3, window_bounds = array<i64: 16, 16>}, {pipeline_mode = #tpu.pipeline_mode<synchronous>, transform_indices = @transform_4, window_bounds = array<i64: 16, 1>}, {pipeline_mode = #tpu.pipeline_mode<synchronous>, transform_indices = @transform_5, window_bounds = array<i64: 4, 16>}, {pipeline_mode = #tpu.pipeline_mode<synchronous>, transform_indices = @transform_6, window_bounds = array<i64: 4, 1>}, {transform_indices = @transform_7, window_bounds = array<i64: 4, 128>}]} {
    %c0 = arith.constant 0 : index
    %c0_0 = arith.constant 0 : index
    %0 = vector.load %arg1[%c0, %c0_0] : memref<16x128xf32, #tpu.memory_space<vmem>>, vector<16x128xf32>
    %c0_1 = arith.constant 0 : index
    %c0_2 = arith.constant 0 : index
    %1 = vector.load %arg2[%c0_1, %c0_2] : memref<16x16xf32, #tpu.memory_space<vmem>>, vector<16x16xf32>
    %cst = arith.constant dense<0.000000e+00> : vector<16x128xf32>
    %2 = tpu.matmul %1, %0, %cst {dimension_numbers = #tpu.dot_dimension_numbers<[1], [0], [0], [1], [0, 0, 1, 1], [], []>} : vector<16x16xf32>, vector<16x128xf32>, vector<16x128xf32> -> vector<16x128xf32>
    %c0_3 = arith.constant 0 : index
    %c0_4 = arith.constant 0 : index
    %3 = vector.load %arg3[%c0_3, %c0_4] : memref<16x1xf32, #tpu.memory_space<vmem>>, vector<16x1xf32>
    %4 = vector.broadcast %3 : vector<16x1xf32> to vector<16x128xf32>
    %5 = arith.addf %2, %4 : vector<16x128xf32>
    %cst_5 = arith.constant 0.000000e+00 : f32
    %6 = vector.broadcast %cst_5 : f32 to vector<16x128xf32>
    %7 = arith.maximumf %5, %6 : vector<16x128xf32>
    %c0_6 = arith.constant 0 : index
    %c0_7 = arith.constant 0 : index
    %8 = vector.load %arg4[%c0_6, %c0_7] : memref<16x16xf32, #tpu.memory_space<vmem>>, vector<16x16xf32>
    %cst_8 = arith.constant dense<0.000000e+00> : vector<16x128xf32>
    %9 = tpu.matmul %8, %7, %cst_8 {dimension_numbers = #tpu.dot_dimension_numbers<[1], [0], [0], [1], [0, 0, 1, 1], [], []>} : vector<16x16xf32>, vector<16x128xf32>, vector<16x128xf32> -> vector<16x128xf32>
    %c0_9 = arith.constant 0 : index
    %c0_10 = arith.constant 0 : index
    %10 = vector.load %arg5[%c0_9, %c0_10] : memref<16x1xf32, #tpu.memory_space<vmem>>, vector<16x1xf32>
    %11 = vector.broadcast %10 : vector<16x1xf32> to vector<16x128xf32>
    %12 = arith.addf %9, %11 : vector<16x128xf32>
    %cst_11 = arith.constant 0.000000e+00 : f32
    %13 = vector.broadcast %cst_11 : f32 to vector<16x128xf32>
    %14 = arith.maximumf %12, %13 : vector<16x128xf32>
    %c0_12 = arith.constant 0 : index
    %c0_13 = arith.constant 0 : index
    %15 = vector.load %arg6[%c0_12, %c0_13] : memref<4x16xf32, #tpu.memory_space<vmem>>, vector<4x16xf32>
    %cst_14 = arith.constant dense<0.000000e+00> : vector<4x128xf32>
    %16 = tpu.matmul %15, %14, %cst_14 {dimension_numbers = #tpu.dot_dimension_numbers<[1], [0], [0], [1], [0, 0, 1, 1], [], []>} : vector<4x16xf32>, vector<16x128xf32>, vector<4x128xf32> -> vector<4x128xf32>
    %c0_15 = arith.constant 0 : index
    %c0_16 = arith.constant 0 : index
    %17 = vector.load %arg7[%c0_15, %c0_16] : memref<4x1xf32, #tpu.memory_space<vmem>>, vector<4x1xf32>
    %18 = vector.broadcast %17 : vector<4x1xf32> to vector<4x128xf32>
    %19 = arith.addf %16, %18 : vector<4x128xf32>
    %cst_17 = arith.constant dense<0xFF800000> : vector<128xf32>
    %20 = vector.multi_reduction <maximumf>, %19, %cst_17 [0] : vector<4x128xf32> to vector<128xf32>
    %21 = vector.shape_cast %20 : vector<128xf32> to vector<1x128xf32>
    %22 = vector.broadcast %21 : vector<1x128xf32> to vector<4x128xf32>
    %23 = arith.subf %19, %22 : vector<4x128xf32>
    %24 = math.exp %23 : vector<4x128xf32>
    %cst_18 = arith.constant dense<0.000000e+00> : vector<128xf32>
    %25 = vector.multi_reduction <add>, %24, %cst_18 [0] : vector<4x128xf32> to vector<128xf32>
    %26 = vector.shape_cast %25 : vector<128xf32> to vector<1x128xf32>
    %27 = tpu.reciprocal %26 {approx = true} : vector<1x128xf32> -> vector<1x128xf32>
    %28 = vector.broadcast %27 : vector<1x128xf32> to vector<4x128xf32>
    %29 = arith.mulf %24, %28 : vector<4x128xf32>
    %c0_19 = arith.constant 0 : index
    %c0_20 = arith.constant 0 : index
    %30 = vector.load %arg8[%c0_19, %c0_20] : memref<4x128xf32, #tpu.memory_space<vmem>>, vector<4x128xf32>
    tpu.vector_store %arg8[%c0_19, %c0_20], %29 {strides = array<i32>} : memref<4x128xf32, #tpu.memory_space<vmem>>, vector<4x128xf32>,
    return
  }
  func.func @transform_0(%arg0: i32) -> (i32, i32) {
    %c0_i32 = arith.constant 0 : i32
    %c0_i32_0 = arith.constant 0 : i32
    return %c0_i32, %arg0 : i32, i32
  }
  func.func @transform_1(%arg0: i32) -> (i32, i32) {
    %c0_i32 = arith.constant 0 : i32
    %c0_i32_0 = arith.constant 0 : i32
    %c0_i32_1 = arith.constant 0 : i32
    return %c0_i32, %c0_i32_0 : i32, i32
  }
  func.func @transform_2(%arg0: i32) -> (i32, i32) {
    %c0_i32 = arith.constant 0 : i32
    %c0_i32_0 = arith.constant 0 : i32
    %c0_i32_1 = arith.constant 0 : i32
    return %c0_i32, %c0_i32_0 : i32, i32
  }
  func.func @transform_3(%arg0: i32) -> (i32, i32) {
    %c0_i32 = arith.constant 0 : i32
    %c0_i32_0 = arith.constant 0 : i32
    %c0_i32_1 = arith.constant 0 : i32
    return %c0_i32, %c0_i32_0 : i32, i32
  }
  func.func @transform_4(%arg0: i32) -> (i32, i32) {
    %c0_i32 = arith.constant 0 : i32
    %c0_i32_0 = arith.constant 0 : i32
    %c0_i32_1 = arith.constant 0 : i32
    return %c0_i32, %c0_i32_0 : i32, i32
  }
  func.func @transform_5(%arg0: i32) -> (i32, i32) {
    %c0_i32 = arith.constant 0 : i32
    %c0_i32_0 = arith.constant 0 : i32
    %c0_i32_1 = arith.constant 0 : i32
    return %c0_i32, %c0_i32_0 : i32, i32
  }
  func.func @transform_6(%arg0: i32) -> (i32, i32) {
    %c0_i32 = arith.constant 0 : i32
    %c0_i32_0 = arith.constant 0 : i32
    %c0_i32_1 = arith.constant 0 : i32
    return %c0_i32, %c0_i32_0 : i32, i32
  }
  func.func @transform_7(%arg0: i32) -> (i32, i32) {
    %c0_i32 = arith.constant 0 : i32
    %c0_i32_0 = arith.constant 0 : i32
    return %c0_i32, %arg0 : i32, i32
  }
}

</mosaic_0001>

<bundles_post_ra>
// kernel: rlcar_forward.1
= control target key start
LH: loop header
LB: loop body
LE: loop exit
PB: predicated region body
PF: predicated region fallthrough
CT: control target
= control target key end

     0   :  { %v189_v2 = vmov 0   ;;  %vm42_vm0 = vcmask 130048   ;;  %vm149_vm1 = vcmask 1043456   ;;  %s274_s0 = inlined_call_operand.vmem [shape: f32[16,128], index: 0, kind: input, shape index: {}]   ;;  %s275_s1 = inlined_call_operand.vmem [shape: f32[16,16], index: 1, kind: input, shape index: {}]   ;;  %s276_s2 = inlined_call_operand.vmem [shape: f32[16,1], index: 2, kind: input, shape index: {}]   ;;  %s277_s4 = inlined_call_operand.vmem [shape: f32[16,1], index: 4, kind: input, shape index: {}]   ;;  %s278_s3 = inlined_call_operand.vmem [shape: f32[16,16], index: 3, kind: input, shape index: {}]   ;;  %s279_s6 = inlined_call_operand.vmem [shape: f32[4,1], index: 6, kind: input, shape index: {}]   ;;  %s280_s5 = inlined_call_operand.vmem [shape: f32[4,16], index: 5, kind: input, shape index: {}]   ;;  %s281_s7 = inlined_call_operand.vmem [shape: f32[4,128], index: 7, kind: output, shape index: {}]  }
   0x1   :  { %v27_v0 = vld [vmem:[%s274_s0 + $0x8] sm:$0xff]  ;;  %v26_v1 = vld [vmem:[%s274_s0] sm:$0xff]  ;;  %182 = vset.pattern.permute.xlu0 %v189_v2  ;;  %183 = vset.pattern.permute.xlu1 %v189_v2 }
   0x2   :  { %63 = vmatpush.msra.mxu0 %v27_v0  ;;  %179 = vmatpush.msra.mxu3 %v27_v0  ;;  %v28_v3 = vld [vmem:[%s275_s1] sm:$0xff]  ;;  %v29_v4 = vld [vmem:[%s275_s1 + $0x8] sm:$0xff] }
   0x3   :  { %v31_v5 = vld [vmem:[%s276_s2 + $0x8] sm:$0xff]  ;;  %184 = vset.pattern.permute.xlu2 %v189_v2  ;;  %v30_v6 = vld [vmem:[%s276_s2] sm:$0xff] }
   0x4   :  { %39 = vperm.xlu0 %182, %v31_v5   ;;  %64 = vmatpush.msra.mxu0 %v26_v1  ;;  %v77_v7 = vld [vmem:[%s277_s4 + $0x8] sm:$0xff]  ;;  %v76_v8 = vld [vmem:[%s277_s4] sm:$0xff] }
   0x5   :  { %180 = vmatpush.msra.mxu3 %v26_v1  ;;  %174 = vmatmul.msk.f32.vlgmr.msra.gmra.mxu0 %vm42_vm0, %v28_v3  ;;  %v74_v17 = vld [vmem:[%s278_s3] sm:$0xff]  ;;  %v75_v18 = vld [vmem:[%s278_s3 + $0x8] sm:$0xff] }
   0x6   :  { %175 = vmatmul.msk.f32.vlgmr.msra.gmra.mxu3 %vm42_vm0, %v29_v4  ;;  %85 = vperm.xlu1 %183, %v77_v7   ;;  %v120_v19 = vld [vmem:[%s279_s6] sm:$0xf] }
   0x7   :  { %123 = vperm.xlu2 %184, %v120_v19   ;;  %v119_v28 = vld [vmem:[%s280_s5] sm:$0xf] }
   0xc   :  { %34 = vperm.xlu0 %182, %v30_v6  }
   0xe   :  { %80 = vperm.xlu1 %183, %v76_v8  }
  0x61   :  { %v124_v29 = vpop.permute.xlu2 %123 }
  0x76   :  { %v40_v9 = vpop.permute.xlu0 %39 }
  0x78   :  { %v86_v20 = vpop.permute.xlu1 %85 }
  0x7e   :  { %v35_v10 = vpop.permute.xlu0 %34 }
  0x80   :  { %v81_v22 = vpop.permute.xlu1 %80 }
  0x82   :  { %v66_v11 = vpop.f32.mrf.mxu0 }
  0x83   :  { %v67_v13 = vadd.f32 %v66_v11, %v35_v10 }
  0x85   :  { %v72_v16 = vmax.f32 %v67_v13, 0.0 }
  0x89   :  { %v69_v12 = vpop.f32.mrf.mxu3 }
  0x8a   :  { %v70_v14 = vadd.f32 %v69_v12, %v40_v9 }
  0x8c   :  { %v73_v15 = vmax.f32 %v70_v14, 0.0 }
  0x8e   :  { %108 = vmatpush.msra.mxu1 %v73_v15 }
  0x90   :  { %109 = vmatpush.msra.mxu1 %v72_v16 }
  0x91   :  { %176 = vmatmul.msk.f32.vlgmr.msra.gmra.mxu1 %vm42_vm0, %v74_v17 }
  0x99   :  { %177 = vmatmul.msk.f32.gmra.mxu1 %vm42_vm0, %v75_v18 }
 0x10e   :  { %v111_v21 = vpop.f32.mrf.mxu1 }
 0x10f   :  { %v112_v24 = vadd.f32 %v111_v21, %v81_v22 }
 0x111   :  { %v117_v27 = vmax.f32 %v112_v24, 0.0 }
 0x116   :  { %v114_v23 = vpop.f32.mrf.mxu1 }
 0x117   :  { %v115_v25 = vadd.f32 %v114_v23, %v86_v20 }
 0x119   :  { %v118_v26 = vmax.f32 %v115_v25, 0.0 }
 0x11b   :  { %143 = vmatpush.msra.mxu2 %v118_v26 }
 0x11d   :  { %144 = vmatpush.msra.mxu2 %v117_v27 }
 0x11e   :  { %178 = vmatmul.msk.f32.vlgmr.msra.gmra.mxu2 %vm42_vm0, %v119_v28 }
 0x1a1   :  { %v146_v30 = vpop.f32.mrf.mxu2 }
 0x1a2   :  { %v147_v31 = vadd.f32 %v146_v30, %v124_v29 }
 0x1a4   :  { %v150_v32 = vsel %vm149_vm1, %v147_v31, -inf }
 0x1a5   :  { %v151_v33 = vrot.slane %v150_v32, 4 }
 0x1a7   :  { %v152_v34 = vmax.f32 %v150_v32, %v151_v33 }
 0x1a9   :  { %v153_v35 = vrot.slane %v152_v34, 2 }
 0x1ab   :  { %v154_v36 = vmax.f32 %v152_v34, %v153_v35 }
 0x1ad   :  { %v155_v37 = vrot.slane %v154_v36, 1 }
 0x1af   :  { %v156_v38 = vmax.f32 %v154_v36, %v155_v37 }
 0x1b1   :  { %v157_v39 = vsub.f32 %v147_v31, %v156_v38 }
 0x1b3   :  { %v158_v40 = vmul.f32 1.442695, %v157_v39 }
 0x1b5   :  { %185 = vpow2.f32 %v158_v40 }
 0x1bb   :  { %v186_v41 = vpop.eup %185 }
 0x1bc   :  { %v160_v42 = vsel %vm149_vm1, %v186_v41, 0.0 }
 0x1bd   :  { %v161_v43 = vrot.slane %v160_v42, 4 }
 0x1bf   :  { %v162_v44 = vadd.f32 %v161_v43, %v160_v42 }
 0x1c1   :  { %v163_v45 = vrot.slane %v162_v44, 2 }
 0x1c3   :  { %v164_v46 = vadd.f32 %v163_v45, %v162_v44 }
 0x1c5   :  { %v165_v47 = vrot.slane %v164_v46, 1 }
 0x1c7   :  { %v166_v48 = vadd.f32 %v165_v47, %v164_v46 }
 0x1c9   :  { %187 = vrcp.f32 %v166_v48 }
 0x1cf   :  { %v188_v49 = vpop.eup %187 }
 0x1d0   :  { %v168_v50 = vmul.f32 %v188_v49, %v186_v41 }
 0x1d2   :  { %169 = vst [vmem:[%s281_s7] sm:$0xf] %v168_v50 }

</bundles_post_ra>
